<compile_context>
chip_gen: v7x
topology: tpu7x:2x2x1
jax: 0.10.0
libtpu: 0.0.40
codegen_flags: <defaults>
</compile_context>

<pallas_src>
import functools

import jax
import jax.numpy as jnp
from jax import lax
from jax.experimental import pallas as pl
from jax.experimental.pallas import tpu as pltpu


# ----------------------------------------------------------------------------
# Fused kernel: patch-embed -> transformer layer -> to_times -> masked L1 sum
# (all batch elements of one block packed along the sublane/M dimension)
# ----------------------------------------------------------------------------
def fused_simmim(patches2d, mask2d, prep):
    """patches2d: (B*N, T) f32, mask2d: (B*N, 1) f32 {0,1}.  Returns (1,1) f32
    = sum over masked rows of |to_times(encoded) - patch| (L1, un-normalized)."""
    BNtot, T = patches2d.shape
    BN = prep["posmask"].shape[0] // 2            # rows handled per grid step
    assert BNtot % BN == 0, "batch_block used in prepare_params must divide B"
    num_blocks = BNtot // BN
    D = prep["wattn"].shape[-1]
    Dff = prep["w1b"].shape[1]

    def kernel(p_ref, m_ref, wpe_ref, pm_ref, bias_ref, wattn_ref, ln_ref,
               w1b_ref, w2b_ref, wtb_ref, out_ref):
        f32, bf16 = jnp.float32, jnp.bfloat16
        p = p_ref[...]                                   # (BN, T) f32
        m = m_ref[...]                                   # (BN, 1) f32 {0,1}

        # --- patch embedding + pos emb (patch-emb bias pre-folded) + mask rows
        tokens = jnp.dot(p.astype(bf16), wpe_ref[...],
                         preferred_element_type=f32) + pm_ref[:BN, :]
        x = jnp.where(m > 0.5, pm_ref[BN:2 * BN, :], tokens)     # (BN, D)

        def layer_norm(h, g, b):
            mu = jnp.mean(h, axis=-1, keepdims=True)
            ms = jnp.mean(h * h, axis=-1, keepdims=True)         # independent reductions
            return (h - mu) * lax.rsqrt(ms - mu * mu + 1e-5) * g + b

        # --- pre-norm single-head attention (1/sqrt(D) folded into Wq) ------
        h = layer_norm(x, ln_ref[0:1, :], ln_ref[1:2, :]).astype(bf16)
        q = jnp.dot(h, wattn_ref[0], preferred_element_type=f32)
        k = jnp.dot(h, wattn_ref[1], preferred_element_type=f32)
        v = jnp.dot(h, wattn_ref[2], preferred_element_type=f32)
        # contract last dims directly (no explicit transpose); block-diagonal
        # bias keeps attention within each batch element of the flattened pack
        s = lax.dot_general(q.astype(bf16), k.astype(bf16),
                            (((1,), (1,)), ((), ())),
                            preferred_element_type=f32) + bias_ref[...]
        s = s - jnp.max(s, axis=-1, keepdims=True)
        e = jnp.exp(s)
        inv = pl.reciprocal(jnp.sum(e, axis=-1, keepdims=True), approx=True)
        attn = jnp.dot(e.astype(bf16), v.astype(bf16),
                       preferred_element_type=f32) * inv
        x = x + jnp.dot(attn.astype(bf16), wattn_ref[3],
                        preferred_element_type=f32)

        # --- feed-forward -----------------------------------------------------
        h2 = layer_norm(x, ln_ref[2:3, :], ln_ref[3:4, :]).astype(bf16)
        f = jnp.dot(h2, w1b_ref[:D, :],
                    preferred_element_type=f32) + w1b_ref[D:D + 1, :]
        # TODO(synk): PyTorch nn.GELU() is exact erf-GELU; tanh approximation used here.
        f = jax.nn.gelu(f, approximate=True)
        f = jnp.dot(f.astype(bf16), w2b_ref[:Dff, :],
                    preferred_element_type=f32) + w2b_ref[Dff:Dff + 1, :]
        enc = x + f                                                # (BN, D)

        # --- to_times projection + mask-weighted L1 partial sum --------------
        # (== gather masked rows then L1, since unmasked rows are weighted 0)
        pred = jnp.dot(enc.astype(bf16), wtb_ref[:D, :],
                       preferred_element_type=f32) + wtb_ref[D:D + 1, :]
        partial = jnp.sum(jnp.abs(pred - p) * m)

        @pl.when(pl.program_id(0) == 0)
        def _():
            out_ref[0, 0] = jnp.float32(0.0)
        out_ref[0, 0] += partial

    def rep2(shape):      # weight block held resident across the grid
        return pl.BlockSpec(shape, lambda b: (0, 0))

    return pl.pallas_call(
        kernel,
        out_shape=jax.ShapeDtypeStruct((1, 1), jnp.float32),
        grid=(num_blocks,),
        in_specs=[
            pl.BlockSpec((BN, T), lambda b: (b, 0)),      # patches (flattened)
            pl.BlockSpec((BN, 1), lambda b: (b, 0)),      # mask
            rep2((T, D)),                                 # patch_to_emb weight (bf16)
            rep2((2 * BN, D)),                            # [pos+b_pe ; mask_token+pos]
            rep2((BN, BN)),                               # block-diagonal attn bias
            pl.BlockSpec((4, D, D), lambda b: (0, 0, 0)), # [Wq*scale, Wk, Wv, Wo] bf16
            rep2((4, D)),                                 # [g1; b1; g2; b2] f32
            rep2((D + 1, Dff)),                           # [W1 ; b1_ffn] bf16
            rep2((Dff + 1, D)),                           # [W2 ; b2_ffn] bf16
            rep2((D + 1, T)),                             # [W_to_times ; b_to_times] bf16
        ],
        # scalar loss accumulated directly in SMEM (no 1-lane VMEM writeback)
        out_specs=pl.BlockSpec(memory_space=pltpu.MemorySpace.SMEM),
        compiler_params=pltpu.CompilerParams(
            # accumulation into the shared SMEM scalar requires "arbitrary";
            # with the default full-batch flattening there is only 1 step anyway.
            dimension_semantics=("arbitrary",)),
    )(patches2d, mask2d, prep["wpe"], prep["posmask"], prep["attn_bias"],
      prep["wattn"], prep["ln"], prep["w1b"], prep["w2b"], prep["wtb"])


# ----------------------------------------------------------------------------
# Parameter construction (deterministic, synthetic) + host-side packing
# ----------------------------------------------------------------------------
def init_params(key, num_patches, T, D, Dff):
    ks = jax.random.split(key, 16)
    n = lambda k, s, sc=0.02: sc * jax.random.normal(k, s, jnp.float32)
    return {
        "pos_emb": n(ks[0], (num_patches + 1, D)),    # encoder.pos_emb.weight
        "w_pe": n(ks[1], (T, D)),                     # patch_to_emb (Linear T->D)
        "b_pe": jnp.zeros((1, D), jnp.float32),
        "mask_token": n(ks[2], (1, D), 1.0),
        "w_t": n(ks[3], (D, T)),                      # to_times (Linear D->T)
        "b_t": jnp.zeros((1, T), jnp.float32),
        "tf": {
            "g1": jnp.ones((1, D), jnp.float32), "b1": jnp.zeros((1, D), jnp.float32),
            "wq": n(ks[4], (D, D)), "wk": n(ks[5], (D, D)),
            "wv": n(ks[6], (D, D)), "wo": n(ks[7], (D, D)),
            "g2": jnp.ones((1, D), jnp.float32), "b2": jnp.zeros((1, D), jnp.float32),
            "w1": n(ks[8], (D, Dff)), "bf1": jnp.zeros((1, Dff), jnp.float32),
            "w2": n(ks[9], (Dff, D)), "bf2": jnp.zeros((1, D), jnp.float32),
        },
    }


def prepare_params(params, N, batch_block):
    """One-time host-side packing (hoisted out of the jitted forward).
    batch_block = batch elements packed per grid step (use B on v5e/v6e;
    ceil(B/2) to split across the two v7x TensorCores at larger B)."""
    tf = params["tf"]
    T, D = params["w_pe"].shape
    bf16 = jnp.bfloat16
    BB = batch_block

    pos = params["pos_emb"][1:N + 1]                       # rows 1..N of the table
    pos_bias = pos + params["b_pe"]                        # fold patch-emb bias
    mask_rows = params["mask_token"] + pos                 # mask_token + pos
    posmask = jnp.concatenate([jnp.tile(pos_bias, (BB, 1)),
                               jnp.tile(mask_rows, (BB, 1))], axis=0)   # (2*BB*N, D)

    bid = jnp.repeat(jnp.arange(BB), N)                    # batch id per flattened row
    attn_bias = jnp.where(bid[:, None] == bid[None, :],
                          0.0, -1e30).astype(jnp.float32)  # (BB*N, BB*N)

    scale = 1.0 / jnp.sqrt(jnp.float32(D))                 # fold 1/sqrt(D) into Wq
    wattn = jnp.stack([tf["wq"] * scale, tf["wk"], tf["wv"], tf["wo"]], 0).astype(bf16)
    ln = jnp.concatenate([tf["g1"], tf["b1"], tf["g2"], tf["b2"]], axis=0)  # (4, D) f32

    return {
        "wpe": params["w_pe"].astype(bf16),                                   # (T, D)
        "posmask": posmask,                                                   # f32
        "attn_bias": attn_bias,                                               # f32
        "wattn": wattn,                                                       # (4,D,D)
        "ln": ln,                                                             # (4, D)
        "w1b": jnp.concatenate([tf["w1"], tf["bf1"]], axis=0).astype(bf16),   # (D+1,Dff)
        "w2b": jnp.concatenate([tf["w2"], tf["bf2"]], axis=0).astype(bf16),   # (Dff+1,D)
        "wtb": jnp.concatenate([params["w_t"], params["b_t"]], axis=0).astype(bf16),
        # untiled f32 copies, used only by the pure-JAX reference
        "pos_bias": pos_bias, "mask_rows": mask_rows,
    }


def make_mask(key, B, N, num_masked):
    """torch.rand(B, N).topk(k).indices + scatter -> bool mask (as f32)."""
    rand = jax.random.uniform(key, (B, N))
    _, masked_indices = lax.top_k(rand, num_masked)
    mask_f = jnp.zeros((B, N), jnp.float32).at[
        jnp.arange(B)[:, None], masked_indices].set(1.0)
    return mask_f[..., None], masked_indices                # (B, N, 1), (B, M)


# ----------------------------------------------------------------------------
# Forward pass (mirrors SimMIM_patch2_seg_chn_sj.forward, return_attention=False)
# ----------------------------------------------------------------------------
def simmim_forward(prep, img, valid_length, mask_f, *, num_masked):
    del valid_length                # present in the torch signature, unused in forward
    B, C, T, J = img.shape
    N = C * J
    # to_patch: 'b c t j -> b (c j) t'
    patches = jnp.transpose(img, (0, 1, 3, 2)).reshape(B, N, T)
    total = fused_simmim(patches.reshape(B * N, T),
                         mask_f.reshape(B * N, 1), prep)    # (1, 1) masked-L1 sum
    l1 = total[0, 0] / (B * num_masked * T)                 # F.l1_loss (mean)
    return l1 / num_masked                                  # / num_masked


# ----------------------------------------------------------------------------
# Pure-JAX reference (per-batch math, gather-based masked L1) for correctness
# ----------------------------------------------------------------------------
def simmim_reference(prep, img, valid_length, mask_f, masked_indices, *, num_masked):
    del valid_length
    B, C, T, J = img.shape
    N = C * J
    bf16, f32 = jnp.bfloat16, jnp.float32
    patches = jnp.transpose(img, (0, 1, 3, 2)).reshape(B, N, T)

    D = prep["wattn"].shape[-1]
    Dff = prep["w1b"].shape[1]
    wq, wk, wv, wo = (prep["wattn"][i] for i in range(4))
    g1, b1, g2, b2 = (prep["ln"][i:i + 1] for i in range(4))
    w1, bf1 = prep["w1b"][:D], prep["w1b"][D:D + 1]
    w2, bf2 = prep["w2b"][:Dff], prep["w2b"][Dff:Dff + 1]
    wt, bt = prep["wtb"][:D], prep["wtb"][D:D + 1]

    tokens = jnp.dot(patches.astype(bf16), prep["wpe"],
                     preferred_element_type=f32) + prep["pos_bias"]
    x = jnp.where(mask_f > 0.5, prep["mask_rows"], tokens)

    def ln(h, g, b):
        mu = jnp.mean(h, -1, keepdims=True)
        ms = jnp.mean(h * h, -1, keepdims=True)
        return (h - mu) * lax.rsqrt(ms - mu * mu + 1e-5) * g + b

    h = ln(x, g1, b1).astype(bf16)
    q = jnp.dot(h, wq, preferred_element_type=f32)
    k = jnp.dot(h, wk, preferred_element_type=f32)
    v = jnp.dot(h, wv, preferred_element_type=f32)
    s = jnp.einsum("bnd,bmd->bnm", q.astype(bf16), k.astype(bf16),
                   preferred_element_type=f32)
    s = s - jnp.max(s, -1, keepdims=True)
    e = jnp.exp(s)
    denom = jnp.sum(e, -1, keepdims=True)
    attn = jnp.einsum("bnm,bmd->bnd", e.astype(bf16), v.astype(bf16),
                      preferred_element_type=f32) / denom
    x = x + jnp.dot(attn.astype(bf16), wo, preferred_element_type=f32)
    h2 = ln(x, g2, b2).astype(bf16)
    f = jnp.dot(h2, w1, preferred_element_type=f32) + bf1
    f = jax.nn.gelu(f, approximate=True)
    f = jnp.dot(f.astype(bf16), w2, preferred_element_type=f32) + bf2
    enc = x + f

    batch_idx = jnp.arange(B)[:, None]
    enc_m = enc[batch_idx, masked_indices]                  # (B, M, D)
    patch_m = patches[batch_idx, masked_indices]            # (B, M, T)
    pred = jnp.dot(enc_m.astype(bf16), wt, preferred_element_type=f32) + bt
    return jnp.mean(jnp.abs(pred - patch_m)) / num_masked


if __name__ == "__main__":
    key = jax.random.PRNGKey(0)
    k_img, k_param, k_mask = jax.random.split(key, 3)

    B, C, T, J = 2, 4, 32, 4          # img: (batch, channel, time, joint)
    D, Dff = 32, 128                  # encoder_dim, FFN hidden
    N = C * J                         # num_patches
    masking_ratio = 0.5
    M = int(masking_ratio * N)        # num_masked

    img = jax.random.normal(k_img, (B, C, T, J), jnp.float32)
    valid_length = jnp.full((B,), T, jnp.int32)

    params = init_params(k_param, N, T, D, Dff)
    # batch_block=B: flatten the whole batch into a single grid step
    # (best on single-TC v5e/v6e; use ceil(B/2) for larger B on v7x).
    prep = prepare_params(params, N, batch_block=B)
    mask_f, masked_indices = make_mask(k_mask, B, N, M)

    fwd = jax.jit(functools.partial(simmim_forward, num_masked=M))
    ref_fn = jax.jit(functools.partial(simmim_reference, num_masked=M))

    loss = jax.block_until_ready(fwd(prep, img, valid_length, mask_f))
    ref = jax.block_until_ready(ref_fn(prep, img, valid_length, mask_f, masked_indices))

    assert jnp.isfinite(loss), "loss is not finite"
    # tolerance accounts for the EUP approximate-reciprocal softmax denominator
    assert jnp.allclose(loss, ref, atol=1e-4, rtol=5e-3), (loss, ref)
    print("KERNEL_OK")
</pallas_src>

<mosaic_0001>
module attributes {stable_mosaic.version = 11 : i64} {
  func.func @kernel(%arg0: i32, %arg1: memref<32x32xf32, #tpu.memory_space<vmem>>, %arg2: memref<32x1xf32, #tpu.memory_space<vmem>>, %arg3: memref<32x32xbf16, #tpu.memory_space<vmem>>, %arg4: memref<64x32xf32, #tpu.memory_space<vmem>>, %arg5: memref<32x32xf32, #tpu.memory_space<vmem>>, %arg6: memref<4x32x32xbf16, #tpu.memory_space<vmem>>, %arg7: memref<4x32xf32, #tpu.memory_space<vmem>>, %arg8: memref<33x128xbf16, #tpu.memory_space<vmem>>, %arg9: memref<129x32xbf16, #tpu.memory_space<vmem>>, %arg10: memref<33x32xbf16, #tpu.memory_space<vmem>>, %arg11: memref<1x1xf32, #tpu.memory_space<smem>>) attributes {dimension_semantics = [#tpu.dimension_semantics<arbitrary>], iteration_bounds = array<i64: 1>, scalar_prefetch = 0 : i64, scratch_operands = 0 : i64, tpu.core_type = #tpu.core_type<tc>, window_params = [{transform_indices = @transform_0, window_bounds = array<i64: 32, 32>}, {transform_indices = @transform_1, window_bounds = array<i64: 32, 1>}, {pipeline_mode = #tpu.pipeline_mode<synchronous>, transform_indices = @transform_2, window_bounds = array<i64: 32, 32>}, {pipeline_mode = #tpu.pipeline_mode<synchronous>, transform_indices = @transform_3, window_bounds = array<i64: 64, 32>}, {pipeline_mode = #tpu.pipeline_mode<synchronous>, transform_indices = @transform_4, window_bounds = array<i64: 32, 32>}, {pipeline_mode = #tpu.pipeline_mode<synchronous>, transform_indices = @transform_5, window_bounds = array<i64: 4, 32, 32>}, {pipeline_mode = #tpu.pipeline_mode<synchronous>, transform_indices = @transform_6, window_bounds = array<i64: 4, 32>}, {pipeline_mode = #tpu.pipeline_mode<synchronous>, transform_indices = @transform_7, window_bounds = array<i64: 33, 128>}, {pipeline_mode = #tpu.pipeline_mode<synchronous>, transform_indices = @transform_8, window_bounds = array<i64: 129, 32>}, {pipeline_mode = #tpu.pipeline_mode<synchronous>, transform_indices = @transform_9, window_bounds = array<i64: 33, 32>}, {transform_indices = @transform_10, window_bounds = array<i64: 1, 1>}]} {
    %c0 = arith.constant 0 : index
    %c0_0 = arith.constant 0 : index
    %0 = vector.load %arg1[%c0, %c0_0] : memref<32x32xf32, #tpu.memory_space<vmem>>, vector<32x32xf32>
    %c0_1 = arith.constant 0 : index
    %c0_2 = arith.constant 0 : index
    %1 = vector.load %arg2[%c0_1, %c0_2] : memref<32x1xf32, #tpu.memory_space<vmem>>, vector<32x1xf32>
    %2 = arith.truncf %0 : vector<32x32xf32> to vector<32x32xbf16>
    %c0_3 = arith.constant 0 : index
    %c0_4 = arith.constant 0 : index
    %3 = vector.load %arg3[%c0_3, %c0_4] : memref<32x32xbf16, #tpu.memory_space<vmem>>, vector<32x32xbf16>
    %cst = arith.constant dense<0.000000e+00> : vector<32x32xf32>
    %4 = tpu.matmul %2, %3, %cst {dimension_numbers = #tpu.dot_dimension_numbers<[1], [0], [0], [1], [0, 0, 1, 1], [], []>} : vector<32x32xbf16>, vector<32x32xbf16>, vector<32x32xf32> -> vector<32x32xf32>
    %c0_5 = arith.constant 0 : index
    %c0_6 = arith.constant 0 : index
    %5 = vector.load %arg4[%c0_5, %c0_6] : memref<64x32xf32, #tpu.memory_space<vmem>>, vector<32x32xf32>
    %6 = arith.addf %4, %5 : vector<32x32xf32>
    %cst_7 = arith.constant 5.000000e-01 : f32
    %7 = vector.broadcast %cst_7 : f32 to vector<32x1xf32>
    %8 = arith.cmpf ogt, %1, %7 : vector<32x1xf32>
    %c32 = arith.constant 32 : index
    %c0_8 = arith.constant 0 : index
    %9 = vector.load %arg4[%c32, %c0_8] : memref<64x32xf32, #tpu.memory_space<vmem>>, vector<32x32xf32>
    %10 = vector.shape_cast %8 : vector<32x1xi1> to vector<32x1xi1>
    %11 = vector.broadcast %10 : vector<32x1xi1> to vector<32x32xi1>
    %12 = arith.select %11, %9, %6 : vector<32x32xi1>, vector<32x32xf32>
    %c0_9 = arith.constant 0 : index
    %c0_10 = arith.constant 0 : index
    %13 = vector.load %arg7[%c0_9, %c0_10] : memref<4x32xf32, #tpu.memory_space<vmem>>, vector<1x32xf32>
    %c1 = arith.constant 1 : index
    %c0_11 = arith.constant 0 : index
    %14 = vector.load %arg7[%c1, %c0_11] : memref<4x32xf32, #tpu.memory_space<vmem>>, vector<1x32xf32>
    %cst_12 = arith.constant dense<0.000000e+00> : vector<32xf32>
    %15 = vector.multi_reduction <add>, %12, %cst_12 [1] : vector<32x32xf32> to vector<32xf32>
    %16 = vector.shape_cast %15 : vector<32xf32> to vector<32x1xf32>
    %cst_13 = arith.constant 3.200000e+01 : f32
    %17 = vector.broadcast %cst_13 : f32 to vector<32x1xf32>
    %18 = arith.divf %16, %17 : vector<32x1xf32>
    %19 = arith.mulf %12, %12 : vector<32x32xf32>
    %cst_14 = arith.constant dense<0.000000e+00> : vector<32xf32>
    %20 = vector.multi_reduction <add>, %19, %cst_14 [1] : vector<32x32xf32> to vector<32xf32>
    %21 = vector.shape_cast %20 : vector<32xf32> to vector<32x1xf32>
    %cst_15 = arith.constant 3.200000e+01 : f32
    %22 = vector.broadcast %cst_15 : f32 to vector<32x1xf32>
    %23 = arith.divf %21, %22 : vector<32x1xf32>
    %24 = vector.broadcast %18 : vector<32x1xf32> to vector<32x32xf32>
    %25 = arith.subf %12, %24 : vector<32x32xf32>
    %26 = arith.mulf %18, %18 : vector<32x1xf32>
    %27 = arith.subf %23, %26 : vector<32x1xf32>
    %cst_16 = arith.constant 9.99999974E-6 : f32
    %28 = vector.broadcast %cst_16 : f32 to vector<32x1xf32>
    %29 = arith.addf %27, %28 : vector<32x1xf32>
    %30 = math.rsqrt %29 : vector<32x1xf32>
    %31 = vector.broadcast %30 : vector<32x1xf32> to vector<32x32xf32>
    %32 = arith.mulf %25, %31 : vector<32x32xf32>
    %33 = vector.broadcast %13 : vector<1x32xf32> to vector<32x32xf32>
    %34 = arith.mulf %32, %33 : vector<32x32xf32>
    %35 = vector.broadcast %14 : vector<1x32xf32> to vector<32x32xf32>
    %36 = arith.addf %34, %35 : vector<32x32xf32>
    %37 = arith.truncf %36 : vector<32x32xf32> to vector<32x32xbf16>
    %c0_17 = arith.constant 0 : index
    %c0_18 = arith.constant 0 : index
    %c0_19 = arith.constant 0 : index
    %38 = vector.load %arg6[%c0_17, %c0_18, %c0_19] : memref<4x32x32xbf16, #tpu.memory_space<vmem>>, vector<1x32x32xbf16>
    %39 = vector.shape_cast %38 : vector<1x32x32xbf16> to vector<32x32xbf16>
    %cst_20 = arith.constant dense<0.000000e+00> : vector<32x32xf32>
    %40 = tpu.matmul %37, %39, %cst_20 {dimension_numbers = #tpu.dot_dimension_numbers<[1], [0], [0], [1], [0, 0, 1, 1], [], []>} : vector<32x32xbf16>, vector<32x32xbf16>, vector<32x32xf32> -> vector<32x32xf32>
    %c1_21 = arith.constant 1 : index
    %c0_22 = arith.constant 0 : index
    %c0_23 = arith.constant 0 : index
    %41 = vector.load %arg6[%c1_21, %c0_22, %c0_23] : memref<4x32x32xbf16, #tpu.memory_space<vmem>>, vector<1x32x32xbf16>
    %42 = vector.shape_cast %41 : vector<1x32x32xbf16> to vector<32x32xbf16>
    %cst_24 = arith.constant dense<0.000000e+00> : vector<32x32xf32>
    %43 = tpu.matmul %37, %42, %cst_24 {dimension_numbers = #tpu.dot_dimension_numbers<[1], [0], [0], [1], [0, 0, 1, 1], [], []>} : vector<32x32xbf16>, vector<32x32xbf16>, vector<32x32xf32> -> vector<32x32xf32>
    %c2 = arith.constant 2 : index
    %c0_25 = arith.constant 0 : index
    %c0_26 = arith.constant 0 : index
    %44 = vector.load %arg6[%c2, %c0_25, %c0_26] : memref<4x32x32xbf16, #tpu.memory_space<vmem>>, vector<1x32x32xbf16>
    %45 = vector.shape_cast %44 : vector<1x32x32xbf16> to vector<32x32xbf16>
    %cst_27 = arith.constant dense<0.000000e+00> : vector<32x32xf32>
    %46 = tpu.matmul %37, %45, %cst_27 {dimension_numbers = #tpu.dot_dimension_numbers<[1], [0], [0], [1], [0, 0, 1, 1], [], []>} : vector<32x32xbf16>, vector<32x32xbf16>, vector<32x32xf32> -> vector<32x32xf32>
    %47 = arith.truncf %40 : vector<32x32xf32> to vector<32x32xbf16>
    %48 = arith.truncf %43 : vector<32x32xf32> to vector<32x32xbf16>
    %cst_28 = arith.constant dense<0.000000e+00> : vector<32x32xf32>
    %49 = tpu.matmul %47, %48, %cst_28 {dimension_numbers = #tpu.dot_dimension_numbers<[1], [1], [0], [0], [0, 0, 1, 0], [], []>} : vector<32x32xbf16>, vector<32x32xbf16>, vector<32x32xf32> -> vector<32x32xf32>
    %c0_29 = arith.constant 0 : index
    %c0_30 = arith.constant 0 : index
    %50 = vector.load %arg5[%c0_29, %c0_30] : memref<32x32xf32, #tpu.memory_space<vmem>>, vector<32x32xf32>
    %51 = arith.addf %49, %50 : vector<32x32xf32>
    %cst_31 = arith.constant dense<0xFF800000> : vector<32xf32>
    %52 = vector.multi_reduction <maximumf>, %51, %cst_31 [1] : vector<32x32xf32> to vector<32xf32>
    %53 = vector.shape_cast %52 : vector<32xf32> to vector<32x1xf32>
    %54 = vector.broadcast %53 : vector<32x1xf32> to vector<32x32xf32>
    %55 = arith.subf %51, %54 : vector<32x32xf32>
    %56 = math.exp %55 : vector<32x32xf32>
    %cst_32 = arith.constant dense<0.000000e+00> : vector<32xf32>
    %57 = vector.multi_reduction <add>, %56, %cst_32 [1] : vector<32x32xf32> to vector<32xf32>
    %58 = vector.shape_cast %57 : vector<32xf32> to vector<32x1xf32>
    %59 = tpu.reciprocal %58 {approx = true} : vector<32x1xf32> -> vector<32x1xf32>
    %60 = arith.truncf %56 : vector<32x32xf32> to vector<32x32xbf16>
    %61 = arith.truncf %46 : vector<32x32xf32> to vector<32x32xbf16>
    %cst_33 = arith.constant dense<0.000000e+00> : vector<32x32xf32>
    %62 = tpu.matmul %60, %61, %cst_33 {dimension_numbers = #tpu.dot_dimension_numbers<[1], [0], [0], [1], [0, 0, 1, 1], [], []>} : vector<32x32xbf16>, vector<32x32xbf16>, vector<32x32xf32> -> vector<32x32xf32>
    %63 = vector.broadcast %59 : vector<32x1xf32> to vector<32x32xf32>
    %64 = arith.mulf %62, %63 : vector<32x32xf32>
    %65 = arith.truncf %64 : vector<32x32xf32> to vector<32x32xbf16>
    %c3 = arith.constant 3 : index
    %c0_34 = arith.constant 0 : index
    %c0_35 = arith.constant 0 : index
    %66 = vector.load %arg6[%c3, %c0_34, %c0_35] : memref<4x32x32xbf16, #tpu.memory_space<vmem>>, vector<1x32x32xbf16>
    %67 = vector.shape_cast %66 : vector<1x32x32xbf16> to vector<32x32xbf16>
    %cst_36 = arith.constant dense<0.000000e+00> : vector<32x32xf32>
    %68 = tpu.matmul %65, %67, %cst_36 {dimension_numbers = #tpu.dot_dimension_numbers<[1], [0], [0], [1], [0, 0, 1, 1], [], []>} : vector<32x32xbf16>, vector<32x32xbf16>, vector<32x32xf32> -> vector<32x32xf32>
    %69 = arith.addf %12, %68 : vector<32x32xf32>
    %c2_37 = arith.constant 2 : index
    %c0_38 = arith.constant 0 : index
    %70 = vector.load %arg7[%c2_37, %c0_38] : memref<4x32xf32, #tpu.memory_space<vmem>>, vector<1x32xf32>
    %c3_39 = arith.constant 3 : index
    %c0_40 = arith.constant 0 : index
    %71 = vector.load %arg7[%c3_39, %c0_40] : memref<4x32xf32, #tpu.memory_space<vmem>>, vector<1x32xf32>
    %cst_41 = arith.constant dense<0.000000e+00> : vector<32xf32>
    %72 = vector.multi_reduction <add>, %69, %cst_41 [1] : vector<32x32xf32> to vector<32xf32>
    %73 = vector.shape_cast %72 : vector<32xf32> to vector<32x1xf32>
    %cst_42 = arith.constant 3.200000e+01 : f32
    %74 = vector.broadcast %cst_42 : f32 to vector<32x1xf32>
    %75 = arith.divf %73, %74 : vector<32x1xf32>
    %76 = arith.mulf %69, %69 : vector<32x32xf32>
    %cst_43 = arith.constant dense<0.000000e+00> : vector<32xf32>
    %77 = vector.multi_reduction <add>, %76, %cst_43 [1] : vector<32x32xf32> to vector<32xf32>
    %78 = vector.shape_cast %77 : vector<32xf32> to vector<32x1xf32>
    %cst_44 = arith.constant 3.200000e+01 : f32
    %79 = vector.broadcast %cst_44 : f32 to vector<32x1xf32>
    %80 = arith.divf %78, %79 : vector<32x1xf32>
    %81 = vector.broadcast %75 : vector<32x1xf32> to vector<32x32xf32>
    %82 = arith.subf %69, %81 : vector<32x32xf32>
    %83 = arith.mulf %75, %75 : vector<32x1xf32>
    %84 = arith.subf %80, %83 : vector<32x1xf32>
    %cst_45 = arith.constant 9.99999974E-6 : f32
    %85 = vector.broadcast %cst_45 : f32 to vector<32x1xf32>
    %86 = arith.addf %84, %85 : vector<32x1xf32>
    %87 = math.rsqrt %86 : vector<32x1xf32>
    %88 = vector.broadcast %87 : vector<32x1xf32> to vector<32x32xf32>
    %89 = arith.mulf %82, %88 : vector<32x32xf32>
    %90 = vector.broadcast %70 : vector<1x32xf32> to vector<32x32xf32>
    %91 = arith.mulf %89, %90 : vector<32x32xf32>
    %92 = vector.broadcast %71 : vector<1x32xf32> to vector<32x32xf32>
    %93 = arith.addf %91, %92 : vector<32x32xf32>
    %94 = arith.truncf %93 : vector<32x32xf32> to vector<32x32xbf16>
    %c0_46 = arith.constant 0 : index
    %c0_47 = arith.constant 0 : index
    %95 = vector.load %arg8[%c0_46, %c0_47] : memref<33x128xbf16, #tpu.memory_space<vmem>>, vector<32x128xbf16>
    %cst_48 = arith.constant dense<0.000000e+00> : vector<32x128xf32>
    %96 = tpu.matmul %94, %95, %cst_48 {dimension_numbers = #tpu.dot_dimension_numbers<[1], [0], [0], [1], [0, 0, 1, 1], [], []>} : vector<32x32xbf16>, vector<32x128xbf16>, vector<32x128xf32> -> vector<32x128xf32>
    %c32_49 = arith.constant 32 : index
    %c0_50 = arith.constant 0 : index
    %97 = vector.load %arg8[%c32_49, %c0_50] : memref<33x128xbf16, #tpu.memory_space<vmem>>, vector<1x128xbf16>
    %98 = arith.extf %97 : vector<1x128xbf16> to vector<1x128xf32>
    %99 = vector.broadcast %98 : vector<1x128xf32> to vector<32x128xf32>
    %100 = arith.addf %96, %99 : vector<32x128xf32>
    %101 = arith.mulf %100, %100 : vector<32x128xf32>
    %102 = arith.mulf %100, %101 : vector<32x128xf32>
    %cst_51 = arith.constant 4.471500e-02 : f32
    %103 = vector.broadcast %cst_51 : f32 to vector<32x128xf32>
    %104 = arith.mulf %103, %102 : vector<32x128xf32>
    %105 = arith.addf %100, %104 : vector<32x128xf32>
    %cst_52 = arith.constant 0.797884583 : f32
    %106 = vector.broadcast %cst_52 : f32 to vector<32x128xf32>
    %107 = arith.mulf %106, %105 : vector<32x128xf32>
    %108 = math.tanh %107 : vector<32x128xf32>
    %cst_53 = arith.constant 1.000000e+00 : f32
    %109 = vector.broadcast %cst_53 : f32 to vector<32x128xf32>
    %110 = arith.addf %109, %108 : vector<32x128xf32>
    %cst_54 = arith.constant 5.000000e-01 : f32
    %111 = vector.broadcast %cst_54 : f32 to vector<32x128xf32>
    %112 = arith.mulf %111, %110 : vector<32x128xf32>
    %113 = arith.mulf %100, %112 : vector<32x128xf32>
    %114 = arith.truncf %113 : vector<32x128xf32> to vector<32x128xbf16>
    %c0_55 = arith.constant 0 : index
    %c0_56 = arith.constant 0 : index
    %115 = vector.load %arg9[%c0_55, %c0_56] : memref<129x32xbf16, #tpu.memory_space<vmem>>, vector<128x32xbf16>
    %cst_57 = arith.constant dense<0.000000e+00> : vector<32x32xf32>
    %116 = tpu.matmul %114, %115, %cst_57 {dimension_numbers = #tpu.dot_dimension_numbers<[1], [0], [0], [1], [0, 0, 1, 1], [], []>} : vector<32x128xbf16>, vector<128x32xbf16>, vector<32x32xf32> -> vector<32x32xf32>
    %c128 = arith.constant 128 : index
    %c0_58 = arith.constant 0 : index
    %117 = vector.load %arg9[%c128, %c0_58] : memref<129x32xbf16, #tpu.memory_space<vmem>>, vector<1x32xbf16>
    %118 = arith.extf %117 : vector<1x32xbf16> to vector<1x32xf32>
    %119 = vector.broadcast %118 : vector<1x32xf32> to vector<32x32xf32>
    %120 = arith.addf %116, %119 : vector<32x32xf32>
    %121 = arith.addf %69, %120 : vector<32x32xf32>
    %122 = arith.truncf %121 : vector<32x32xf32> to vector<32x32xbf16>
    %c0_59 = arith.constant 0 : index
    %c0_60 = arith.constant 0 : index
    %123 = vector.load %arg10[%c0_59, %c0_60] : memref<33x32xbf16, #tpu.memory_space<vmem>>, vector<32x32xbf16>
    %cst_61 = arith.constant dense<0.000000e+00> : vector<32x32xf32>
    %124 = tpu.matmul %122, %123, %cst_61 {dimension_numbers = #tpu.dot_dimension_numbers<[1], [0], [0], [1], [0, 0, 1, 1], [], []>} : vector<32x32xbf16>, vector<32x32xbf16>, vector<32x32xf32> -> vector<32x32xf32>
    %c32_62 = arith.constant 32 : index
    %c0_63 = arith.constant 0 : index
    %125 = vector.load %arg10[%c32_62, %c0_63] : memref<33x32xbf16, #tpu.memory_space<vmem>>, vector<1x32xbf16>
    %126 = arith.extf %125 : vector<1x32xbf16> to vector<1x32xf32>
    %127 = vector.broadcast %126 : vector<1x32xf32> to vector<32x32xf32>
    %128 = arith.addf %124, %127 : vector<32x32xf32>
    %129 = arith.subf %128, %0 : vector<32x32xf32>
    %130 = math.absf %129 : vector<32x32xf32>
    %131 = vector.broadcast %1 : vector<32x1xf32> to vector<32x32xf32>
    %132 = arith.mulf %130, %131 : vector<32x32xf32>
    %133 = vector.shape_cast %132 : vector<32x32xf32> to vector<1x32x32xf32>
    %cst_64 = arith.constant dense<0.000000e+00> : vector<1xf32>
    %134 = vector.multi_reduction <add>, %133, %cst_64 [1, 2] : vector<1x32x32xf32> to vector<1xf32>
    %135 = vector.shape_cast %134 : vector<1xf32> to vector<1x1x1xf32>
    %136 = vector.extract %135[0, 0, 0] : f32 from vector<1x1x1xf32>
    %c0_i32 = arith.constant 0 : i32
    %137 = arith.cmpi eq, %arg0, %c0_i32 : i32
    %138 = arith.extui %137 : i1 to i32
    %c0_i32_65 = arith.constant 0 : i32
    %139 = arith.cmpi ne, %138, %c0_i32_65 : i32
    scf.if %139 {
      %cst_70 = arith.constant 0.000000e+00 : f32
      %c0_71 = arith.constant 0 : index
      %c0_72 = arith.constant 0 : index
      %143 = memref.load %arg11[%c0_71, %c0_72] : memref<1x1xf32, #tpu.memory_space<smem>>
      memref.store %cst_70, %arg11[%c0_71, %c0_72] : memref<1x1xf32, #tpu.memory_space<smem>>
    } else {
    }
    %c0_66 = arith.constant 0 : index
    %c0_67 = arith.constant 0 : index
    %140 = memref.load %arg11[%c0_66, %c0_67] : memref<1x1xf32, #tpu.memory_space<smem>>
    %141 = arith.addf %140, %136 : f32
    %c0_68 = arith.constant 0 : index
    %c0_69 = arith.constant 0 : index
    %142 = memref.load %arg11[%c0_68, %c0_69] : memref<1x1xf32, #tpu.memory_space<smem>>
    memref.store %141, %arg11[%c0_68, %c0_69] : memref<1x1xf32, #tpu.memory_space<smem>>
    return
  }
  func.func @transform_0(%arg0: i32) -> (i32, i32) {
    %c0_i32 = arith.constant 0 : i32
    %c0_i32_0 = arith.constant 0 : i32
    return %arg0, %c0_i32 : i32, i32
  }
  func.func @transform_1(%arg0: i32) -> (i32, i32) {
    %c0_i32 = arith.constant 0 : i32
    %c0_i32_0 = arith.constant 0 : i32
    return %arg0, %c0_i32 : i32, i32
  }
  func.func @transform_2(%arg0: i32) -> (i32, i32) {
    %c0_i32 = arith.constant 0 : i32
    %c0_i32_0 = arith.constant 0 : i32
    %c0_i32_1 = arith.constant 0 : i32
    return %c0_i32, %c0_i32_0 : i32, i32
  }
  func.func @transform_3(%arg0: i32) -> (i32, i32) {
    %c0_i32 = arith.constant 0 : i32
    %c0_i32_0 = arith.constant 0 : i32
    %c0_i32_1 = arith.constant 0 : i32
    return %c0_i32, %c0_i32_0 : i32, i32
  }
  func.func @transform_4(%arg0: i32) -> (i32, i32) {
    %c0_i32 = arith.constant 0 : i32
    %c0_i32_0 = arith.constant 0 : i32
    %c0_i32_1 = arith.constant 0 : i32
    return %c0_i32, %c0_i32_0 : i32, i32
  }
  func.func @transform_5(%arg0: i32) -> (i32, i32, i32) {
    %c0_i32 = arith.constant 0 : i32
    %c0_i32_0 = arith.constant 0 : i32
    %c0_i32_1 = arith.constant 0 : i32
    %c0_i32_2 = arith.constant 0 : i32
    return %c0_i32, %c0_i32_0, %c0_i32_1 : i32, i32, i32
  }
  func.func @transform_6(%arg0: i32) -> (i32, i32) {
    %c0_i32 = arith.constant 0 : i32
    %c0_i32_0 = arith.constant 0 : i32
    %c0_i32_1 = arith.constant 0 : i32
    return %c0_i32, %c0_i32_0 : i32, i32
  }
  func.func @transform_7(%arg0: i32) -> (i32, i32) {
    %c0_i32 = arith.constant 0 : i32
    %c0_i32_0 = arith.constant 0 : i32
    %c0_i32_1 = arith.constant 0 : i32
    return %c0_i32, %c0_i32_0 : i32, i32
  }
  func.func @transform_8(%arg0: i32) -> (i32, i32) {
    %c0_i32 = arith.constant 0 : i32
    %c0_i32_0 = arith.constant 0 : i32
    %c0_i32_1 = arith.constant 0 : i32
    return %c0_i32, %c0_i32_0 : i32, i32
  }
  func.func @transform_9(%arg0: i32) -> (i32, i32) {
    %c0_i32 = arith.constant 0 : i32
    %c0_i32_0 = arith.constant 0 : i32
    %c0_i32_1 = arith.constant 0 : i32
    return %c0_i32, %c0_i32_0 : i32, i32
  }
  func.func @transform_10(%arg0: i32) -> (i32, i32) {
    %c0_i32 = arith.constant 0 : i32
    %c0_i32_0 = arith.constant 0 : i32
    %c0_i32_1 = arith.constant 0 : i32
    return %c0_i32, %c0_i32_0 : i32, i32
  }
}

</mosaic_0001>

<bundles_post_ra>
// kernel: simmim_forward.1
= control target key start
LH: loop header
LB: loop body
LE: loop exit
PB: predicated region body
PF: predicated region fallthrough
CT: control target
= control target key end

     0   :  { %vm67_vm0 = vcmask 261120   ;;  %v1438_v5 = vmov 0   ;;  %s1797_s0 = inlined_call_operand.vmem [shape: f32[32,32], index: 0, kind: input, shape index: {}]   ;;  %s1798_s1 = inlined_call_operand.vmem [shape: f32[32,1], index: 1, kind: input, shape index: {}]   ;;  %s1799_s2 = inlined_call_operand.vmem [shape: bf16[32,32], index: 2, kind: input, shape index: {}]   ;;  %s1800_s3 = inlined_call_operand.vmem [shape: f32[64,32], index: 3, kind: input, shape index: {}]   ;;  %s1801_s4 = inlined_call_operand.vmem [shape: f32[32,32], index: 4, kind: input, shape index: {}]   ;;  %s1802_s5 = inlined_call_operand.vmem [shape: bf16[4,32,32], index: 5, kind: input, shape index: {}]   ;;  %s1803_s6 = inlined_call_operand.vmem [shape: f32[4,32], index: 6, kind: input, shape index: {}]   ;;  %s1804_s7 = inlined_call_operand.vmem [shape: bf16[33,128], index: 7, kind: input, shape index: {}]   ;;  %s1805_s8 = inlined_call_operand.vmem [shape: bf16[129,32], index: 8, kind: input, shape index: {}]   ;;  %s1806_s9 = inlined_call_operand.vmem [shape: bf16[33,32], index: 9, kind: input, shape index: {}]   ;;  %s1807_s10 = inlined_call_operand.hbm [shape: f32[1,1], index: 10, kind: output, shape index: {}]  }
   0x1   :  { %v1360_v0 = vld [vmem:[%s1799_s2] sm:$0xff]   ;;  %v1361_v1 = vld [vmem:[%s1799_s2 + $0x8] sm:$0xff]   ;;  %v39_v4 = vld [vmem:[%s1797_s0 + $0x10] sm:$0xff]  ;;  %1359 = vset.pattern.permute.xlu1 %v1438_v5  ;;  %1358 = vset.pattern.permute.xlu0 %v1438_v5 }
   0x2   :  { %1259 = vmatprep.subr.bf16.mxu0 %v1360_v0  ;;  %v37_v2 = vld [vmem:[%s1797_s0] sm:$0xff]  ;;  %v38_v3 = vld [vmem:[%s1797_s0 + $0x8] sm:$0xff]  ;;  %v40_v7 = vld [vmem:[%s1797_s0 + $0x18] sm:$0xff] }
   0x3   :  { %1260 = vmatpush3.bf16.msra.mxu0 %v1360_v0  ;;  %v45_v6 = vpack.c.bf16 %v38_v3, %v37_v2  ;;  %v1516_v8 = vld [vmem:[%s1798_s1 + $0x10] sm:$0xff]  ;;  %v1521_v9 = vld [vmem:[%s1798_s1] sm:$0xff]  ;;  %v1528_v10 = vld [vmem:[%s1798_s1 + $0x18] sm:$0xff]  ;;  %v46_v14 = vpack.c.bf16 %v40_v7, %v39_v4 }
   0x4   :  { %1261 = vmatprep.subr.bf16.mxu0 %v1361_v1  ;;  %vm125_vm1 = vcmp.gt.f32.partialorder %v1516_v8, 0.5  ;;  %vm123_vm2 = vcmp.gt.f32.partialorder %v1521_v9, 0.5  ;;  %v1533_v11 = vld [vmem:[%s1798_s1 + $0x8] sm:$0xff]  ;;  %vm126_vm3 = vcmp.gt.f32.partialorder %v1528_v10, 0.5 }
   0x5   :  { %1263 = vmatprep.mubr.msk.bf16.mxu0 %vm67_vm0, %v45_v6  ;;  %v133_v12 = vsel %vm125_vm1, 1, %v1438_v5  ;;  %v131_v13 = vsel %vm123_vm2, 1, %v1438_v5  ;;  %vm124_vm4 = vcmp.gt.f32.partialorder %v1533_v11, 0.5  ;;  %v134_v15 = vsel %vm126_vm3, 1, %v1438_v5 }
   0x6   :  { %142 = vperm.xlu1 %1359, %v133_v12   ;;  %136 = vperm.xlu0 %1358, %v131_v13   ;;  %v132_v16 = vsel %vm124_vm4, 1, %v1438_v5 }
   0x7   :  { %1262 = vmatpush3.bf16.msra.mxu0 %v1361_v1 }
   0xa   :  { %1264 = vmatmul.mubr.msk.bf16.vlgmr.msra.gmra.mrb[0].mxu0 %vm67_vm0, %v46_v14  ;;  %145 = vperm.xlu1 %1359, %v134_v15  }
   0xb   :  { %139 = vperm.xlu0 %1358, %v132_v16  }
   0xc   :  { %15 = vsyncpa [#allocation3], 0  ;;  %v53_v18 = vld [vmem:[%s1800_s3 + $0x10] sm:$0xff]  ;;  %v51_v20 = vld [vmem:[%s1800_s3] sm:$0xff]  ;;  %s1426_s21 = scalar_lea.hbm %s1807_s10, 16 }
   0xd   :  { %v129_v23 = vld [vmem:[%s1800_s3 + $0x30] sm:$0xff]  ;;  %v52_v26 = vld [vmem:[%s1800_s3 + $0x8] sm:$0xff]  ;;  %v127_v27 = vld [vmem:[%s1800_s3 + $0x20] sm:$0xff]  ;;  %p1427_p0 = scmp.ne.s32.totalorder %s1807_s10, %s1426_s21  ;;  %p1430_p1 = scmp.lt.u32.totalorder %s1426_s21, %s1807_s10 }
   0xe   :  { %v54_v29 = vld [vmem:[%s1800_s3 + $0x18] sm:$0xff]  ;;  %v128_v32 = vld [vmem:[%s1800_s3 + $0x28] sm:$0xff]  ;;  %v1362_v53 = vld [vmem:[%s1802_s5] sm:$0xff]  }
   0xf   :  { %v130_v40 = vld [vmem:[%s1800_s3 + $0x38] sm:$0xff]  ;;  %v1363_v54 = vld [vmem:[%s1802_s5 + $0x20] sm:$0xff]   ;;  %1267 = vmatprep.subr.bf16.mxu0 %v1362_v53  ;;  %v1364_v55 = vld [vmem:[%s1802_s5 + $0x8] sm:$0xff]   ;;  %p1432_p2 = pnand %p1430_p1, %p1427_p0 }
  0x10   :  { %1283 = vmatprep.subr.bf16.mxu1 %v1363_v54  ;;  %1268 = vmatpush3.bf16.msra.mxu0 %v1362_v53  ;;  %v1365_v56 = vld [vmem:[%s1802_s5 + $0x28] sm:$0xff]   ;;  %v1606_v57 = vld [vmem:[%s1802_s5 + $0x10] sm:$0xff]  }
  0x11   :  { %1284 = vmatpush3.bf16.msra.mxu1 %v1363_v54  ;;  %1269 = vmatprep.subr.bf16.mxu0 %v1364_v55  ;;  %v1367_v54 = vld [vmem:[%s1802_s5 + $0x18] sm:$0xff]  }
  0x12   :  { %1285 = vmatprep.subr.bf16.mxu1 %v1365_v56 }
  0x14   :  { %1270 = vmatpush3.bf16.msra.mxu0 %v1364_v55 }
  0x15   :  { %1286 = vmatpush3.bf16.msra.mxu1 %v1365_v56  ;;  %1275 = vmatprep.subr.bf16.mxu0 %v1606_v57 }
  0x85   :  { %v137_v17 = vpop.permute.xlu0 %136  ;;  %v143_v19 = vpop.permute.xlu1 %142 }
  0x86   :  { %vm149_vm5 = vcmp.eq.s32.totalorder %v143_v19, 1  ;;  %vm147_vm6 = vcmp.eq.s32.totalorder %v137_v17, 1 }
  0x89   :  { %v146_v37 = vpop.permute.xlu1 %145 }
  0x8a   :  { %v140_v22 = vpop.permute.xlu0 %139  ;;  %vm150_vm8 = vcmp.eq.s32.totalorder %v146_v37, 1 }
  0x8b   :  { %vm148_vm7 = vcmp.eq.s32.totalorder %v140_v22, 1 }
  0xdd   :  { %v1265_v21 = vpop.f32.mrb[0].mxu0 }
  0xde   :  { %v117_v24 = vadd.f32 %v1265_v21, %v53_v18  ;;  %v108_v25 = vpop.f32.mrb[1].mxu0 }
  0xdf   :  { %v109_v28 = vadd.f32 %v108_v25, %v51_v20  ;;  %v1266_v30 = vpop.f32.mrb[2].mxu0 }
  0xe0   :  { %v111_v31 = vpop.f32.mrb[3].mxu0  ;;  %v1560_v33 = vsel %vm149_vm5, %v129_v23, %v117_v24  ;;  %v120_v38 = vadd.f32 %v1266_v30, %v54_v29  ;;  %v1161_v29 = vld [vmem:[%s1803_s6] ss:$0 sm:$0xff] }
  0xe1   :  { %v112_v34 = vadd.f32 %v111_v31, %v52_v26  ;;  %v163_v35 = vsel %vm67_vm0, %v1560_v33, 0.0  ;;  %v1564_v36 = vsel %vm147_vm6, %v127_v27, %v109_v28  ;;  %v176_v46 = vmul.f32 %v1560_v33, %v1560_v33 }
  0xe2   :  { %164 = vadd.xlane.f32.xlu0 %v163_v35  ;;  %v174_v42 = vmul.f32 %v1564_v36, %v1564_v36  ;;  %v157_v43 = vsel %vm67_vm0, %v1564_v36, 0.0  ;;  %v1577_v44 = vsel %vm150_vm8, %v130_v40, %v120_v38  ;;  %v1162_v40 = vld [vmem:[%s1803_s6 + $0x1] ss:$0 sm:$0xff] }
  0xe3   :  { %v1566_v39 = vsel %vm148_vm7, %v128_v32, %v112_v34  ;;  %v166_v47 = vsel %vm67_vm0, %v1577_v44, 0.0  ;;  %v184_v49 = vsel %vm67_vm0, %v176_v46, 0.0  ;;  %v177_v51 = vmul.f32 %v1577_v44, %v1577_v44 }
  0xe4   :  { %v160_v41 = vsel %vm67_vm0, %v1566_v39, 0.0  ;;  %v178_v45 = vsel %vm67_vm0, %v174_v42, 0.0  ;;  %v175_v48 = vmul.f32 %v1566_v39, %v1566_v39 }
  0xe5   :  { %161 = vadd.xlane.f32.xlu1 %v160_v41  ;;  %v187_v52 = vsel %vm67_vm0, %v177_v51, 0.0 }
  0xe6   :  { %158 = vadd.xlane.f32.xlu0 %v157_v43  ;;  %v181_v50 = vsel %vm67_vm0, %v175_v48, 0.0 }
  0xe9   :  { %179 = vadd.xlane.f32.xlu1 %v178_v45 }
  0xea   :  { %167 = vadd.xlane.f32.xlu0 %v166_v47 }
  0xed   :  { %185 = vadd.xlane.f32.xlu1 %v184_v49 }
  0xee   :  { %182 = vadd.xlane.f32.xlu0 %v181_v50 }
  0xf2   :  { %188 = vadd.xlane.f32.xlu0 %v187_v52 }
 0x16f   :  { %v165_v58 = vpop.xlane.xlu0 %164 }
 0x170   :  { %v172_v0 = vmul.f32 0.03125, %v165_v58 }
 0x172   :  { %v162_v59 = vpop.xlane.xlu1 %161  ;;  %v200_v6 = vmul.f32 %v172_v0, %v172_v0  ;;  %v196_v31 = vsub.f32 %v1560_v33, %v172_v0 }
 0x173   :  { %v159_v60 = vpop.xlane.xlu0 %158  ;;  %v171_v3 = vmul.f32 0.03125, %v162_v59 }
 0x174   :  { %v170_v61 = vmul.f32 0.03125, %v159_v60 }
 0x175   :  { %v199_v14 = vmul.f32 %v171_v3, %v171_v3  ;;  %v195_v32 = vsub.f32 %v1566_v39, %v171_v3 }
 0x176   :  { %v198_v62 = vmul.f32 %v170_v61, %v170_v61  ;;  %v180_v63 = vpop.xlane.xlu1 %179  ;;  %v194_v27 = vsub.f32 %v1564_v36, %v170_v61 }
 0x177   :  { %v190_v1 = vmul.f32 0.03125, %v180_v63  ;;  %v168_v2 = vpop.xlane.xlu0 %167 }
 0x178   :  { %v173_v15 = vmul.f32 0.03125, %v168_v2 }
 0x179   :  { %v202_v4 = vsub.f32 %v190_v1, %v198_v62 }
 0x17a   :  { %v186_v5 = vpop.xlane.xlu1 %185  ;;  %v201_v21 = vmul.f32 %v173_v15, %v173_v15  ;;  %v197_v41 = vsub.f32 %v1577_v44, %v173_v15  ;;  %v443_v15 = vld [vmem:[%s1801_s4] sm:$0xff] }
 0x17b   :  { %v206_v7 = vadd.f32 1e-05, %v202_v4  ;;  %v192_v12 = vmul.f32 0.03125, %v186_v5  ;;  %v183_v13 = vpop.xlane.xlu0 %182 }
 0x17c   :  { %v191_v16 = vmul.f32 0.03125, %v183_v13 }
 0x17d   :  { %1382 = vrsqrt.f32 %v206_v7  ;;  %v204_v17 = vsub.f32 %v192_v12, %v200_v6 }
 0x17e   :  { %v203_v18 = vsub.f32 %v191_v16, %v199_v14 }
 0x17f   :  { %v208_v19 = vadd.f32 1e-05, %v204_v17  ;;  %v189_v20 = vpop.xlane.xlu0 %188  ;;  %v445_v17 = vld [vmem:[%s1801_s4 + $0x10] sm:$0xff] }
 0x180   :  { %v207_v22 = vadd.f32 1e-05, %v203_v18  ;;  %v193_v23 = vmul.f32 0.03125, %v189_v20 }
 0x181   :  { %1384 = vrsqrt.f32 %v208_v19  ;;  %v444_v19 = vld [vmem:[%s1801_s4 + $0x8] sm:$0xff] }
 0x182   :  { %1386 = vrsqrt.f32 %v207_v22  ;;  %v205_v24 = vsub.f32 %v193_v23, %v201_v21  ;;  %v446_v22 = vld [vmem:[%s1801_s4 + $0x18] sm:$0xff] }
 0x184   :  { %v209_v25 = vadd.f32 1e-05, %v205_v24 }
 0x186   :  { %1388 = vrsqrt.f32 %v209_v25 }
 0x187   :  { %v1383_v26 = vpop.eup %1382 }
 0x188   :  { %v214_v28 = vmul.f32 %v1383_v26, %v194_v27 }
 0x18a   :  { %v222_v38 = vmul.f32 %v1161_v29, %v214_v28 }
 0x18b   :  { %v1385_v30 = vpop.eup %1384 }
 0x18c   :  { %v1387_v34 = vpop.eup %1386  ;;  %v216_v35 = vmul.f32 %v1385_v30, %v196_v31  ;;  %v230_v46 = vadd.f32 %v1162_v40, %v222_v38 }
 0x18d   :  { %v215_v37 = vmul.f32 %v1387_v34, %v195_v32 }
 0x18e   :  { %v224_v48 = vmul.f32 %v1161_v29, %v216_v35 }
 0x18f   :  { %v223_v42 = vmul.f32 %v1161_v29, %v215_v37 }
 0x190   :  { %v1389_v43 = vpop.eup %1388  ;;  %v232_v51 = vadd.f32 %v1162_v40, %v224_v48 }
 0x191   :  { %v217_v45 = vmul.f32 %v1389_v43, %v197_v41  ;;  %v231_v47 = vadd.f32 %v1162_v40, %v223_v42 }
 0x193   :  { %v234_v49 = vpack.c.bf16 %v231_v47, %v230_v46  ;;  %v225_v50 = vmul.f32 %v1161_v29, %v217_v45 }
 0x195   :  { %1271 = vmatprep.mubr.msk.bf16.mxu0 %vm67_vm0, %v234_v49  ;;  %1287 = vmatprep.mubr.msk.bf16.mxu1 %vm67_vm0, %v234_v49  ;;  %v233_v52 = vadd.f32 %v1162_v40, %v225_v50 }
 0x197   :  { %v235_v53 = vpack.c.bf16 %v233_v52, %v232_v51 }
 0x199   :  { %1272 = vmatmul.mubr.msk.bf16.vlgmr.msra.gmra.mrb[4].mxu0 %vm67_vm0, %v235_v53  ;;  %1288 = vmatmul.mubr.msk.bf16.vlgmr.msra.gmra.mrb[0].mxu1 %vm67_vm0, %v235_v53 }
 0x19a   :  { %1276 = vmatpush3.bf16.msra.mxu0 %v1606_v57  ;;  %1279 = vmatprep.mubr.msk.bf16.mxu0 %vm67_vm0, %v234_v49 }
 0x19b   :  { %1277 = vmatprep.subr.bf16.mxu0 %v1367_v54 }
 0x19e   :  { %1278 = vmatpush3.bf16.msra.mxu0 %v1367_v54 }
 0x1a1   :  { %1280 = vmatmul.mubr.msk.bf16.vlgmr.msra.gmra.mrb[8].mxu0 %vm67_vm0, %v235_v53 }
 0x26c   :  { %v1273_v55 = vpop.f32.mrb[4].mxu0  ;;  %v1289_v56 = vpop.f32.mrb[0].mxu1 }
 0x26d   :  { %v292_v58 = vpop.f32.mrb[5].mxu0  ;;  %v424_v59 = vpop.f32.mrb[1].mxu1 }
 0x26e   :  { %v1274_v60 = vpop.f32.mrb[6].mxu0  ;;  %v1290_v61 = vpop.f32.mrb[2].mxu1 }
 0x26f   :  { %v440_v62 = vpack.c.bf16 %v1274_v60, %v1273_v55  ;;  %v551_v63 = vpack.c.bf16 %v1290_v61, %v1289_v56  ;;  %v295_v0 = vpop.f32.mrb[7].mxu0  ;;  %v427_v1 = vpop.f32.mrb[3].mxu1 }
 0x270   :  { %v439_v2 = vpack.c.bf16 %v295_v0, %v292_v58  ;;  %v550_v3 = vpack.c.bf16 %v427_v1, %v424_v59  ;;  %v1368_v58 = vld [vmem:[%s1802_s5 + $0x30] sm:$0xff]   ;;  %v1369_v59 = vld [vmem:[%s1802_s5 + $0x38] sm:$0xff]  }
 0x272   :  { %1295 = vmatprep.mubr.msk.bf16.mxu0 %vm67_vm0, %v439_v2  ;;  %1299 = vmatprep.subr.bf16.mxu1 %v550_v3 }
 0x273   :  { %1300 = vmatpush3.bf16.msra.mxu1 %v550_v3 }
 0x274   :  { %v1281_v57 = vpop.f32.mrb[8].mxu0  ;;  %1301 = vmatprep.subr.bf16.mxu1 %v551_v63 }
 0x275   :  { %v358_v4 = vpop.f32.mrb[9].mxu0 }
 0x276   :  { %v1282_v5 = vpop.f32.mrb[10].mxu0 }
 0x277   :  { %v442_v6 = vpack.c.bf16 %v1282_v5, %v1281_v57  ;;  %v361_v7 = vpop.f32.mrb[11].mxu0  ;;  %1302 = vmatpush3.bf16.msra.mxu1 %v551_v63 }
 0x278   :  { %v441_v12 = vpack.c.bf16 %v361_v7, %v358_v4  ;;  %1307 = vmatprep.subr.bf16.mxu1 %v1368_v58 }
 0x279   :  { %v457_v14 = vsel %vm67_vm0, %v442_v6, 0 }
 0x27a   :  { %v454_v13 = vsel %vm67_vm0, %v441_v12, 0  ;;  %1351 = vmatprep.subr.msk.bf16.mxu0 %vm67_vm0, %v441_v12 }
 0x27b   :  { %1292 = vmatpush3.bf16.xpose.msra.mxu0 %v454_v13 }
 0x27c   :  { %1352 = vmatprep.subr.msk.bf16.mxu0 %vm67_vm0, %v442_v6 }
 0x283   :  { %1294 = vmatpush3.bf16.xpose.msra.mxu0 %v457_v14 }
 0x28a   :  { %1296 = vmatmul.mubr.msk.bf16.vlgmr.msra.gmra.mrb[12].mxu0 %vm67_vm0, %v440_v62 }
 0x35d   :  { %v1297_v16 = vpop.f32.mrb[12].mxu0 }
 0x35e   :  { %v493_v18 = vpop.f32.mrb[13].mxu0  ;;  %v502_v24 = vadd.f32 %v1297_v16, %v445_v17 }
 0x35f   :  { %v494_v20 = vadd.f32 %v493_v18, %v443_v15  ;;  %v1298_v21 = vpop.f32.mrb[14].mxu0 }
 0x360   :  { %v496_v23 = vpop.f32.mrb[15].mxu0  ;;  %v505_v27 = vadd.f32 %v1298_v21, %v446_v22  ;;  %v514_v29 = vsel %vm67_vm0, %v502_v24, -inf }
 0x361   :  { %v497_v25 = vadd.f32 %v496_v23, %v444_v19  ;;  %v508_v26 = vsel %vm67_vm0, %v494_v20, -inf }
 0x362   :  { %509 = vmax.xlane.f32.xlu1 %v508_v26  ;;  %v517_v30 = vsel %vm67_vm0, %v505_v27, -inf }
 0x363   :  { %v511_v28 = vsel %vm67_vm0, %v497_v25, -inf }
 0x364   :  { %512 = vmax.xlane.f32.xlu0 %v511_v28 }
 0x366   :  { %515 = vmax.xlane.f32.xlu1 %v514_v29 }
 0x368   :  { %518 = vmax.xlane.f32.xlu0 %v517_v30 }
 0x3ef   :  { %v510_v31 = vpop.xlane.xlu1 %509 }
 0x3f0   :  { %v520_v32 = vsub.f32 %v494_v20, %v510_v31 }
 0x3f1   :  { %v513_v34 = vpop.xlane.xlu0 %512 }
 0x3f2   :  { %v524_v35 = vmul.f32 1.442695, %v520_v32  ;;  %v521_v37 = vsub.f32 %v497_v25, %v513_v34  ;;  %v1370_v34 = vld [vmem:[%s1804_s7] sm:$0xff]  }
 0x3f3   :  { %v516_v38 = vpop.xlane.xlu1 %515  ;;  %1315 = vmatprep.subr.bf16.mxu0 %v1370_v34 }
 0x3f4   :  { %1390 = vpow2.f32 %v524_v35  ;;  %v526_v40 = vmul.f32 1.442695, %v521_v37  ;;  %v522_v41 = vsub.f32 %v502_v24, %v516_v38  ;;  %v1371_v35 = vld [vmem:[%s1804_s7 + $0x8] sm:$0xff]   ;;  %1316 = vmatpush3.bf16.msra.mxu0 %v1370_v34  ;;  %v1378_v34 = vld [vmem:[%s1805_s8 + $0x30] sm:$0xff]  }
 0x3f5   :  { %v519_v42 = vpop.xlane.xlu0 %518  ;;  %1317 = vmatprep.subr.bf16.mxu0 %v1371_v35 }
 0x3f6   :  { %1392 = vpow2.f32 %v526_v40  ;;  %v528_v43 = vmul.f32 1.442695, %v522_v41  ;;  %v523_v45 = vsub.f32 %v505_v27, %v519_v42 }
 0x3f8   :  { %1394 = vpow2.f32 %v528_v43  ;;  %v530_v46 = vmul.f32 1.442695, %v523_v45  ;;  %1318 = vmatpush3.bf16.msra.mxu0 %v1371_v35  ;;  %v1379_v35 = vld [vmem:[%s1805_s8 + $0x38] sm:$0xff]  }
 0x3fa   :  { %1396 = vpow2.f32 %v530_v46 }
 0x3fe   :  { %v1391_v47 = vpop.eup %1390 }
 0x3ff   :  { %v532_v48 = vsel %vm67_vm0, %v1391_v47, 0.0 }
 0x400   :  { %v1393_v49 = vpop.eup %1392  ;;  %533 = vadd.xlane.f32.xlu1 %v532_v48 }
 0x401   :  { %v535_v50 = vsel %vm67_vm0, %v1393_v49, 0.0  ;;  %v548_v51 = vpack.c.bf16 %v1393_v49, %v1391_v47 }
 0x402   :  { %v1395_v52 = vpop.eup %1394  ;;  %536 = vadd.xlane.f32.xlu0 %v535_v50 }
 0x403   :  { %1303 = vmatprep.mubr.msk.bf16.mxu1 %vm67_vm0, %v548_v51  ;;  %v538_v53 = vsel %vm67_vm0, %v1395_v52, 0.0 }
 0x404   :  { %v1397_v54 = vpop.eup %1396  ;;  %539 = vadd.xlane.f32.xlu1 %v538_v53 }
 0x405   :  { %v541_v55 = vsel %vm67_vm0, %v1397_v54, 0.0  ;;  %v549_v56 = vpack.c.bf16 %v1397_v54, %v1395_v52 }
 0x406   :  { %542 = vadd.xlane.f32.xlu0 %v541_v55 }
 0x407   :  { %1304 = vmatmul.mubr.msk.bf16.vlgmr.msra.gmra.mrb[4].mxu1 %vm67_vm0, %v549_v56 }
 0x408   :  { %1308 = vmatpush3.bf16.msra.mxu1 %v1368_v58 }
 0x409   :  { %1309 = vmatprep.subr.bf16.mxu1 %v1369_v59 }
 0x40c   :  { %1310 = vmatpush3.bf16.msra.mxu1 %v1369_v59 }
 0x48d   :  { %v534_v60 = vpop.xlane.xlu1 %533 }
 0x48e   :  { %1398 = vrcp.f32 %v534_v60 }
 0x48f   :  { %v537_v61 = vpop.xlane.xlu0 %536 }
 0x491   :  { %v540_v62 = vpop.xlane.xlu1 %539 }
 0x492   :  { %1400 = vrcp.f32 %v540_v62 }
 0x493   :  { %v543_v63 = vpop.xlane.xlu0 %542 }
 0x494   :  { %1402 = vrcp.f32 %v543_v63 }
 0x495   :  { %1404 = vrcp.f32 %v537_v61 }
 0x498   :  { %v1399_v0 = vpop.eup %1398 }
 0x49c   :  { %v1401_v2 = vpop.eup %1400 }
 0x49e   :  { %v1403_v57 = vpop.eup %1402 }
 0x49f   :  { %v1405_v5 = vpop.eup %1404 }
 0x4da   :  { %v1305_v1 = vpop.f32.mrb[4].mxu1 }
 0x4db   :  { %v592_v3 = vpop.f32.mrb[5].mxu1  ;;  %v609_v6 = vmul.f32 %v1401_v2, %v1305_v1  ;;  %v1195_v2 = vld [vmem:[%s1803_s6 + $0x2] ss:$0 sm:$0xff] }
 0x4dc   :  { %v1306_v4 = vpop.f32.mrb[6].mxu1  ;;  %v607_v13 = vmul.f32 %v1399_v0, %v592_v3 }
 0x4dd   :  { %v610_v7 = vmul.f32 %v1403_v57, %v1306_v4  ;;  %v595_v12 = vpop.f32.mrb[7].mxu1 }
 0x4de   :  { %v608_v14 = vmul.f32 %v1405_v5, %v595_v12 }
 0x4df   :  { %v612_v15 = vpack.c.bf16 %v610_v7, %v609_v6 }
 0x4e0   :  { %v611_v16 = vpack.c.bf16 %v608_v14, %v607_v13  ;;  %v1196_v13 = vld [vmem:[%s1803_s6 + $0x3] ss:$0 sm:$0xff] }
 0x4e2   :  { %1311 = vmatprep.mubr.msk.bf16.mxu1 %vm67_vm0, %v611_v16 }
 0x4e3   :  { %1312 = vmatmul.mubr.msk.bf16.vlgmr.msra.gmra.mrb[8].mxu1 %vm67_vm0, %v612_v15 }
 0x5b6   :  { %v1313_v17 = vpop.f32.mrb[8].mxu1 }
 0x5b7   :  { %v1666_v18 = vadd.f32 %v1313_v17, %v1560_v33  ;;  %v670_v19 = vpop.f32.mrb[9].mxu1 }
 0x5b8   :  { %v1314_v20 = vpop.f32.mrb[10].mxu1  ;;  %v1669_v21 = vadd.f32 %v670_v19, %v1564_v36 }
 0x5b9   :  { %v1672_v22 = vadd.f32 %v1314_v20, %v1577_v44  ;;  %v673_v23 = vpop.f32.mrb[11].mxu1  ;;  %v697_v24 = vsel %vm67_vm0, %v1666_v18, 0.0  ;;  %v709_v28 = vmul.f32 %v1666_v18, %v1666_v18 }
 0x5ba   :  { %698 = vadd.xlane.f32.xlu1 %v697_v24  ;;  %v1677_v25 = vadd.f32 %v673_v23, %v1566_v39  ;;  %v691_v26 = vsel %vm67_vm0, %v1669_v21, 0.0  ;;  %v707_v36 = vmul.f32 %v1669_v21, %v1669_v21 }
 0x5bb   :  { %v700_v33 = vsel %vm67_vm0, %v1672_v22, 0.0  ;;  %v710_v30 = vmul.f32 %v1672_v22, %v1672_v22  ;;  %v717_v31 = vsel %vm67_vm0, %v709_v28, 0.0  ;;  %v1373_v28 = vld [vmem:[%s1805_s8 + $0x8] sm:$0xff]  }
 0x5bc   :  { %701 = vadd.xlane.f32.xlu0 %v700_v33  ;;  %v694_v44 = vsel %vm67_vm0, %v1677_v25, 0.0  ;;  %v708_v27 = vmul.f32 %v1677_v25, %v1677_v25  ;;  %v711_v39 = vsel %vm67_vm0, %v707_v36, 0.0 }
 0x5bd   :  { %v720_v32 = vsel %vm67_vm0, %v710_v30, 0.0  ;;  %v1375_v30 = vld [vmem:[%s1805_s8 + $0x18] sm:$0xff]  }
 0x5be   :  { %692 = vadd.xlane.f32.xlu1 %v691_v26  ;;  %v714_v29 = vsel %vm67_vm0, %v708_v27, 0.0 }
 0x5c0   :  { %695 = vadd.xlane.f32.xlu0 %v694_v44 }
 0x5c2   :  { %712 = vadd.xlane.f32.xlu1 %v711_v39  ;;  %v1372_v39 = vld [vmem:[%s1805_s8] sm:$0xff]  }
 0x5c3   :  { %1323 = vmatprep.subr.bf16.mxu1 %v1372_v39 }
 0x5c4   :  { %715 = vadd.xlane.f32.xlu0 %v714_v29  ;;  %1324 = vmatpush3.bf16.msra.mxu1 %v1372_v39  ;;  %v1374_v29 = vld [vmem:[%s1805_s8 + $0x10] sm:$0xff]   ;;  %v1380_v39 = vld [vmem:[%s1806_s9] sm:$0xff]  }
 0x5c5   :  { %1325 = vmatprep.subr.bf16.mxu1 %v1373_v28  ;;  %1343 = vmatprep.subr.bf16.mxu0 %v1380_v39 }
 0x5c6   :  { %718 = vadd.xlane.f32.xlu1 %v717_v31  ;;  %v1376_v31 = vld [vmem:[%s1805_s8 + $0x20] sm:$0xff]  }
 0x5c8   :  { %721 = vadd.xlane.f32.xlu0 %v720_v32  ;;  %1326 = vmatpush3.bf16.msra.mxu1 %v1373_v28  ;;  %v1377_v32 = vld [vmem:[%s1805_s8 + $0x28] sm:$0xff]  }
 0x5c9   :  { %1327 = vmatprep.subr.bf16.mxu1 %v1374_v29  ;;  %v1381_v28 = vld [vmem:[%s1806_s9 + $0x8] sm:$0xff]  }
 0x5cc   :  { %1328 = vmatpush3.bf16.msra.mxu1 %v1374_v29  ;;  %v900_v29 = vld [vmem:[%s1805_s8 + $0x40] sm:$0x1] }
 0x5cd   :  { %1329 = vmatprep.subr.bf16.mxu1 %v1375_v30 }
 0x5d0   :  { %1330 = vmatpush3.bf16.msra.mxu1 %v1375_v30  ;;  %v901_v30 = vunpack.c.l.bf16 %v900_v29 }
 0x5d1   :  { %1331 = vmatprep.subr.bf16.mxu1 %v1376_v31 }
 0x5d4   :  { %1332 = vmatpush3.bf16.msra.mxu1 %v1376_v31 }
 0x5d5   :  { %1333 = vmatprep.subr.bf16.mxu1 %v1377_v32 }
 0x5d7   :  { %1096 = vperm.xlu1 %1359, %v1521_v9  }
 0x5d8   :  { %1334 = vmatpush3.bf16.msra.mxu1 %v1377_v32 }
 0x5d9   :  { %1335 = vmatprep.subr.bf16.mxu1 %v1378_v34 }
 0x5db   :  { %1106 = vperm.xlu1 %1359, %v1516_v8  }
 0x5dc   :  { %1336 = vmatpush3.bf16.msra.mxu1 %v1378_v34 }
 0x5dd   :  { %1337 = vmatprep.subr.bf16.mxu1 %v1379_v35 }
 0x5de   :  { %1101 = vperm.xlu0 %1358, %v1533_v11  }
 0x5df   :  { %1111 = vperm.xlu1 %1359, %v1528_v10  }
 0x5e0   :  { %1338 = vmatpush3.bf16.msra.mxu1 %v1379_v35 }
 0x647   :  { %v699_v37 = vpop.xlane.xlu1 %698 }
 0x648   :  { %v705_v10 = vmul.f32 0.03125, %v699_v37  ;;  %v775_v37 = vlaneseq }
 0x649   :  { %v702_v9 = vpop.xlane.xlu0 %701 }
 0x64a   :  { %v706_v45 = vmul.f32 0.03125, %v702_v9  ;;  %v733_v51 = vmul.f32 %v705_v10, %v705_v10  ;;  %v729_v5 = vsub.f32 %v1666_v18, %v705_v10  ;;  %v776_v9 = vshrl.u32 %v775_v37, 7 }
 0x64b   :  { %v693_v38 = vpop.xlane.xlu1 %692 }
 0x64c   :  { %v703_v8 = vmul.f32 0.03125, %v693_v38  ;;  %v734_v55 = vmul.f32 %v706_v45, %v706_v45  ;;  %v730_v14 = vsub.f32 %v1672_v22, %v706_v45  ;;  %v773_v38 = vld [vmem:[%s1804_s7 + $0x10] sm:$0x1] }
 0x64d   :  { %v696_v40 = vpop.xlane.xlu0 %695 }
 0x64e   :  { %v704_v11 = vmul.f32 0.03125, %v696_v40  ;;  %v731_v42 = vmul.f32 %v703_v8, %v703_v8  ;;  %v727_v0 = vsub.f32 %v1669_v21, %v703_v8  ;;  %v774_v8 = vunpack.c.l.bf16 %v773_v38 }
 0x64f   :  { %v713_v41 = vpop.xlane.xlu1 %712  ;;  %v1746_v40 = vsub.s32 0, %v776_v9 }
 0x650   :  { %v723_v43 = vmul.f32 0.03125, %v713_v41  ;;  %v732_v47 = vmul.f32 %v704_v11, %v704_v11  ;;  %v728_v3 = vsub.f32 %v1677_v25, %v704_v11 }
 0x651   :  { %v716_v46 = vpop.xlane.xlu0 %715  ;;  %v778_v11 = vrot.slane %v774_v8, %v1746_v40  ;;  %v905_v31 = vrot.slane %v901_v30, %v1746_v40 }
 0x652   :  { %v735_v48 = vsub.f32 %v723_v43, %v731_v42  ;;  %v724_v49 = vmul.f32 0.03125, %v716_v46 }
 0x653   :  { %v719_v50 = vpop.xlane.xlu1 %718 }
 0x654   :  { %v739_v52 = vadd.f32 1e-05, %v735_v48  ;;  %v736_v53 = vsub.f32 %v724_v49, %v732_v47  ;;  %v725_v54 = vmul.f32 0.03125, %v719_v50 }
 0x655   :  { %v722_v56 = vpop.xlane.xlu0 %721 }
 0x656   :  { %1406 = vrsqrt.f32 %v739_v52  ;;  %v740_v58 = vadd.f32 1e-05, %v736_v53  ;;  %v737_v59 = vsub.f32 %v725_v54, %v733_v51  ;;  %v726_v60 = vmul.f32 0.03125, %v722_v56 }
 0x658   :  { %1408 = vrsqrt.f32 %v740_v58  ;;  %v741_v61 = vadd.f32 1e-05, %v737_v59  ;;  %v738_v62 = vsub.f32 %v726_v60, %v734_v55 }
 0x65a   :  { %1410 = vrsqrt.f32 %v741_v61  ;;  %v742_v63 = vadd.f32 1e-05, %v738_v62 }
 0x65c   :  { %1412 = vrsqrt.f32 %v742_v63 }
 0x660   :  { %v1407_v1 = vpop.eup %1406 }
 0x661   :  { %v747_v57 = vmul.f32 %v1407_v1, %v727_v0 }
 0x662   :  { %v1409_v4 = vpop.eup %1408 }
 0x663   :  { %v748_v6 = vmul.f32 %v1409_v4, %v728_v3  ;;  %v755_v7 = vmul.f32 %v1195_v2, %v747_v57 }
 0x664   :  { %v1411_v12 = vpop.eup %1410 }
 0x665   :  { %v749_v15 = vmul.f32 %v1411_v12, %v729_v5  ;;  %v756_v16 = vmul.f32 %v1195_v2, %v748_v6  ;;  %v763_v20 = vadd.f32 %v1196_v13, %v755_v7 }
 0x666   :  { %v1413_v17 = vpop.eup %1412 }
 0x667   :  { %v750_v19 = vmul.f32 %v1413_v17, %v730_v14  ;;  %v764_v23 = vadd.f32 %v1196_v13, %v756_v16  ;;  %v757_v24 = vmul.f32 %v1195_v2, %v749_v15 }
 0x669   :  { %v767_v33 = vpack.c.bf16 %v764_v23, %v763_v20  ;;  %v758_v26 = vmul.f32 %v1195_v2, %v750_v19  ;;  %v765_v36 = vadd.f32 %v1196_v13, %v757_v24 }
 0x66b   :  { %1319 = vmatprep.mubr.msk.bf16.mxu0 %vm67_vm0, %v767_v33  ;;  %v766_v44 = vadd.f32 %v1196_v13, %v758_v26 }
 0x66d   :  { %v768_v27 = vpack.c.bf16 %v766_v44, %v765_v36 }
 0x66f   :  { %1320 = vmatmul.mubr.msk.bf16.vlgmr.msra.gmra.mrb[16].mxu0 %vm67_vm0, %v768_v27 }
 0x670   :  { %1344 = vmatpush3.bf16.msra.mxu0 %v1380_v39 }
 0x671   :  { %1345 = vmatprep.subr.bf16.mxu0 %v1381_v28 }
 0x674   :  { %1346 = vmatpush3.bf16.msra.mxu0 %v1381_v28 }
 0x742   :  { %v1321_v41 = vpop.f32.mrb[16].mxu0 }
 0x743   :  { %v840_v10 = vadd.f32 %v1321_v41, %v778_v11  ;;  %v831_v42 = vpop.f32.mrb[17].mxu0 }
 0x744   :  { %v832_v43 = vadd.f32 %v831_v42, %v778_v11  ;;  %v1322_v45 = vpop.f32.mrb[18].mxu0 }
 0x745   :  { %v848_v46 = vmul.f32 %v840_v10, %v840_v10  ;;  %v843_v47 = vadd.f32 %v1322_v45, %v778_v11  ;;  %v834_v48 = vpop.f32.mrb[19].mxu0 }
 0x746   :  { %v846_v49 = vmul.f32 %v832_v43, %v832_v43  ;;  %v835_v50 = vadd.f32 %v834_v48, %v778_v11 }
 0x747   :  { %v852_v51 = vmul.f32 %v848_v46, %v840_v10  ;;  %v849_v52 = vmul.f32 %v843_v47, %v843_v47 }
 0x748   :  { %v850_v53 = vmul.f32 %v846_v49, %v832_v43  ;;  %v847_v54 = vmul.f32 %v835_v50, %v835_v50 }
 0x749   :  { %v856_v55 = vmul.f32 0.044715, %v852_v51  ;;  %v853_v56 = vmul.f32 %v849_v52, %v843_v47 }
 0x74a   :  { %v854_v58 = vmul.f32 0.044715, %v850_v53  ;;  %v851_v59 = vmul.f32 %v847_v54, %v835_v50 }
 0x74b   :  { %v860_v60 = vadd.f32 %v856_v55, %v840_v10  ;;  %v857_v61 = vmul.f32 0.044715, %v853_v56  ;;  %v1423_v56 = vld [vmem:[%s1797_s0] sm:$0xff] }
 0x74c   :  { %v858_v62 = vadd.f32 %v854_v58, %v832_v43  ;;  %v855_v63 = vmul.f32 0.044715, %v851_v59 }
 0x74d   :  { %v864_v0 = vmul.f32 0.7978846, %v860_v60  ;;  %v861_v1 = vadd.f32 %v857_v61, %v843_v47  ;;  %v1424_v60 = vld [vmem:[%s1797_s0 + $0x18] sm:$0xff] }
 0x74e   :  { %v862_v2 = vmul.f32 0.7978846, %v858_v62  ;;  %v859_v3 = vadd.f32 %v855_v63, %v835_v50 }
 0x74f   :  { %1414 = vtanh.f32 %v864_v0  ;;  %v865_v57 = vmul.f32 0.7978846, %v861_v1  ;;  %v1425_v0 = vld [vmem:[%s1797_s0 + $0x8] sm:$0xff] }
 0x750   :  { %1416 = vtanh.f32 %v862_v2  ;;  %v863_v4 = vmul.f32 0.7978846, %v859_v3 }
 0x751   :  { %1418 = vtanh.f32 %v865_v57 }
 0x752   :  { %1420 = vtanh.f32 %v863_v4  ;;  %v1102_v4 = vpop.permute.xlu0 %1101 }
 0x759   :  { %v1415_v5 = vpop.eup %1414 }
 0x75a   :  { %v1417_v6 = vpop.eup %1416  ;;  %v872_v7 = vadd.f32 1.0, %v1415_v5 }
 0x75b   :  { %v1419_v12 = vpop.eup %1418  ;;  %v870_v13 = vadd.f32 1.0, %v1417_v6 }
 0x75c   :  { %v1421_v14 = vpop.eup %1420  ;;  %v876_v15 = vmul.f32 0.5, %v872_v7  ;;  %v873_v16 = vadd.f32 1.0, %v1419_v12 }
 0x75d   :  { %v871_v17 = vadd.f32 1.0, %v1421_v14  ;;  %v874_v19 = vmul.f32 0.5, %v870_v13 }
 0x75e   :  { %v877_v20 = vmul.f32 0.5, %v873_v16  ;;  %v880_v24 = vmul.f32 %v876_v15, %v840_v10 }
 0x75f   :  { %v875_v23 = vmul.f32 0.5, %v871_v17  ;;  %v878_v26 = vmul.f32 %v874_v19, %v832_v43 }
 0x760   :  { %v881_v33 = vmul.f32 %v877_v20, %v843_v47  ;;  %v1013_v47 = vld [vmem:[%s1806_s9 + $0x10] sm:$0x1] }
 0x761   :  { %v879_v36 = vmul.f32 %v875_v23, %v835_v50  ;;  %v1014_v48 = vunpack.c.l.bf16 %v1013_v47 }
 0x762   :  { %v883_v44 = vpack.c.bf16 %v881_v33, %v880_v24 }
 0x763   :  { %v882_v27 = vpack.c.bf16 %v879_v36, %v878_v26  ;;  %v1018_v49 = vrot.slane %v1014_v48, %v1746_v40 }
 0x765   :  { %1339 = vmatprep.mubr.bf16.mxu1 %v882_v27 }
 0x766   :  { %1340 = vmatmul.mubr.bf16.vlgmr.msra.gmra.mrb[12].mxu1 %v883_v44 }
 0x839   :  { %v1341_v32 = vpop.f32.mrb[12].mxu1 }
 0x83a   :  { %v997_v34 = vadd.f32 %v1341_v32, %v905_v31  ;;  %v988_v35 = vpop.f32.mrb[13].mxu1 }
 0x83b   :  { %v989_v37 = vadd.f32 %v988_v35, %v905_v31  ;;  %v1342_v9 = vpop.f32.mrb[14].mxu1 }
 0x83c   :  { %v1000_v38 = vadd.f32 %v1342_v9, %v905_v31  ;;  %v991_v8 = vpop.f32.mrb[15].mxu1  ;;  %v1005_v41 = vadd.f32 %v997_v34, %v1666_v18  ;;  %v1097_v18 = vpop.permute.xlu1 %1096 }
 0x83d   :  { %v992_v11 = vadd.f32 %v991_v8, %v905_v31  ;;  %v1003_v42 = vadd.f32 %v989_v37, %v1669_v21 }
 0x83e   :  { %v1006_v10 = vadd.f32 %v1000_v38, %v1672_v22 }
 0x83f   :  { %v1004_v43 = vadd.f32 %v992_v11, %v1677_v25  ;;  %v1422_v25 = vld [vmem:[%s1797_s0 + $0x10] sm:$0xff] }
 0x840   :  { %v1008_v45 = vpack.c.bf16 %v1006_v10, %v1005_v41  ;;  %v1107_v40 = vpop.permute.xlu1 %1106 }
 0x841   :  { %v1007_v46 = vpack.c.bf16 %v1004_v43, %v1003_v42 }
 0x843   :  { %1347 = vmatprep.mubr.msk.bf16.mxu0 %vm67_vm0, %v1007_v46 }
 0x844   :  { %1348 = vmatmul.mubr.msk.bf16.vlgmr.msra.gmra.mrb[20].mxu0 %vm67_vm0, %v1008_v45  ;;  %v1112_v7 = vpop.permute.xlu1 %1111 }
 0x917   :  { %v1349_v50 = vpop.f32.mrb[20].mxu0 }
 0x918   :  { %v1080_v22 = vadd.f32 %v1349_v50, %v1018_v49  ;;  %v1071_v51 = vpop.f32.mrb[21].mxu0 }
 0x919   :  { %v1072_v21 = vadd.f32 %v1071_v51, %v1018_v49  ;;  %v1350_v52 = vpop.f32.mrb[22].mxu0 }
 0x91a   :  { %v1088_v53 = vsub.f32 %v1080_v22, %v1422_v25  ;;  %v1083_v54 = vadd.f32 %v1350_v52, %v1018_v49  ;;  %v1074_v55 = vpop.f32.mrb[23].mxu0 }
 0x91b   :  { %v1086_v58 = vsub.f32 %v1072_v21, %v1423_v56  ;;  %v1075_v59 = vadd.f32 %v1074_v55, %v1018_v49 }
 0x91c   :  { %v1089_v61 = vsub.f32 %v1083_v54, %v1424_v60  ;;  %v1092_v62 = vand.u32 2147483647, %v1088_v53 }
 0x91d   :  { %v1090_v63 = vand.u32 2147483647, %v1086_v58  ;;  %v1087_v1 = vsub.f32 %v1075_v59, %v1425_v0 }
 0x91e   :  { %v1093_v3 = vand.u32 2147483647, %v1089_v61  ;;  %v1116_v5 = vmul.f32 %v1107_v40, %v1092_v62 }
 0x91f   :  { %v1114_v2 = vmul.f32 %v1097_v18, %v1090_v63  ;;  %v1091_v57 = vand.u32 2147483647, %v1087_v1 }
 0x920   :  { %v1117_v12 = vmul.f32 %v1112_v7, %v1093_v3  ;;  %v1121_v16 = vsel %vm67_vm0, %v1116_v5, 0.0 }
 0x921   :  { %v1115_v6 = vmul.f32 %v1102_v4, %v1091_v57  ;;  %v1118_v13 = vsel %vm67_vm0, %v1114_v2, 0.0 }
 0x922   :  { %v1123_v19 = vsel %vm67_vm0, %v1117_v12, 0.0 }
 0x923   :  { %v1119_v14 = vsel %vm67_vm0, %v1115_v6, 0.0 }
 0x924   :  { %v1120_v15 = vadd.f32 %v1119_v14, %v1118_v13 }
 0x926   :  { %v1122_v17 = vadd.f32 %v1121_v16, %v1120_v15 }
 0x928   :  { %v1124_v20 = vadd.f32 %v1123_v19, %v1122_v17 }
 0x92a   :  { %1125 = vadd.xlane.f32.xlu0 %v1124_v20 }
 0x9b7   :  { %v1126_v23 = vpop.xlane.xlu0 %1125 }
 0x9b8   :  { %v1127_v24 = vrot.slane %v1126_v23, 4 }
 0x9ba   :  { %v1128_v33 = vadd.f32 %v1127_v24, %v1126_v23 }
 0x9bc   :  { %v1129_v26 = vrot.slane %v1128_v33, 2 }
 0x9be   :  { %v1130_v36 = vadd.f32 %v1129_v26, %v1128_v33 }
 0x9c0   :  { %v1131_v44 = vrot.slane %v1130_v36, 1 }
 0x9c2   :  { %v1132_v27 = vadd.f32 %v1131_v44, %v1130_v36 }
 0x9c4   :  { %1353 = vpush %v1132_v27 }
 0x9f5   :  { %s1354_s0 = spop %1353 }
 0x9f6   :  { %1143 = sst [smem:[#allocation2]] %s1354_s0 }
 0x9f7   :  { %1435 = shalt.err (!%p1432_p2)
}
 0x9f8   :  { %s1439_s25 = smov [#allocation2]  }
 0x9f9   :  { %1151 = dma.smem_to_hbm %s1439_s25, 16, %s1807_s10, [#allocation3]  }
 0x9fa   :  { %1436 = dma.done.wait [#allocation3], 16  }
 0x9fb   :  { %1437 = vsyncadd [#allocation3], 4294967280 }
 0x9fc   :  { %1155 = sfence }
 0x9fd   :  { %1156 = vsyncpa [#allocation3], 1 }

</bundles_post_ra>
